<compile_context>
chip_gen: v6e
topology: v6e:2x2x1
jax: 0.10.0
libtpu: 0.0.40
codegen_flags: <defaults>
</compile_context>

<pallas_src>
import jax
import jax.numpy as jnp
from jax.experimental import pallas as pl
from jax.experimental.pallas import tpu as pltpu

_EPS = 1e-9  # Dice epsilon (matches the PyTorch module)


def _dice(x, alpha):
    """PyTorch Dice: normalize over dim=0 (batch); torch.var is unbiased (ddof=1).

    Combine simplified to x * (alpha + (1-alpha)*p) — same math, fewer VALU ops.
    NOTE: B == 1 divides by zero (NaN/Inf), matching the PyTorch reference.
    """
    b = x.shape[0]
    mean = jnp.mean(x, axis=0, keepdims=True)
    var = jnp.sum((x - mean) ** 2, axis=0, keepdims=True) / (b - 1)
    p = jax.nn.sigmoid((x - mean) * jax.lax.rsqrt(var + _EPS))
    return x * (alpha + (1.0 - alpha) * p)


def _make_attention_kernel(use_bf16_elementwise):
    """Kernel closure; `use_bf16_elementwise` is False on v5e (no bf16 VPU)."""

    def kernel(q_ref, ub_ref, hqb1_ref, wup_ref, a1_ref,
               w2_ref, b2_ref, a2_ref, w3_ref, b3_ref,
               pooled_ref, attn_ref):
        q = q_ref[...]                        # (B, 1, E)  f32
        ub = ub_ref[...]                      # (B, tS, E) f32
        B, tS, E = ub.shape
        f1 = wup_ref.shape[1]
        f2 = w2_ref.shape[1]

        # ---- pooled output: exact f32 partial sum over this tile's rows ----
        pooled_ref[0] = jnp.sum(ub, axis=1)                       # (B, E)

        # ---- fused first matmul: [ub, q*ub] @ [Wu-Wd; Wp], one MXU pass ----
        if use_bf16_elementwise:
            ub_c = ub.astype(jnp.bfloat16)
            q_c = q.astype(jnp.bfloat16)
            x_up = jnp.concatenate([ub_c, q_c * ub_c], axis=-1)   # (B,tS,2E) bf16
        else:
            x_up = jnp.concatenate([ub, q * ub], axis=-1).astype(jnp.bfloat16)

        h1 = jnp.dot(x_up.reshape(B * tS, 2 * E), wup_ref[...],
                     preferred_element_type=jnp.float32).reshape(B, tS, f1)
        h1 = h1 + hqb1_ref[...][:, None, :]       # hoisted q@(Wq+Wd)+b1 (f32)
        h1 = _dice(h1, a1_ref[0])
        # TODO(synk): nn.Dropout(p) between layers is identity here (eval-mode).

        h2 = jnp.dot(h1.reshape(B * tS, f1).astype(jnp.bfloat16), w2_ref[...],
                     preferred_element_type=jnp.float32).reshape(B, tS, f2)
        h2 = _dice(h2 + b2_ref[...], a2_ref[0])

        # Final Linear(F2, 1) as VPU multiply + lane reduce (no N=1 MXU pass)
        attn_ref[0] = jnp.sum(h2 * w3_ref[...], axis=-1) + b3_ref[0]   # (B, tS)

    return kernel


def _pooled_only_kernel(ub_ref, pooled_ref):
    # Fast path: the module's forward only returns user_behavior.sum(dim=1).
    pooled_ref[0] = jnp.sum(ub_ref[...], axis=1)


# ----------------------------- wrapper helpers -----------------------------

def _round_up(x, m):
    return ((x + m - 1) // m) * m


def _vmem_capacity_bytes():
    try:
        return int(pltpu.get_tpu_info().vmem_capacity_bytes)
    except Exception:
        return 64 << 20  # v7x-safe default


def _device_kind():
    try:
        return jax.devices()[0].device_kind.lower()
    except Exception:
        return ""


def _choose_tiling(S, rows_budget, min_tiles, seq_tile=None):
    """tS is a multiple of 8; sequence is zero-padded to n_tiles * tS."""
    s_pad8 = _round_up(max(S, 8), 8)
    if seq_tile is not None:
        tS = min(_round_up(max(int(seq_tile), 8), 8), s_pad8)
    else:
        n_target = max(min_tiles, pl.cdiv(s_pad8, rows_budget))
        tS = _round_up(pl.cdiv(s_pad8, n_target), 8)
    n_tiles = pl.cdiv(s_pad8, tS)
    return tS, n_tiles, n_tiles * tS


def attention_pooling(query_ad, user_behavior, mask, params,
                      compute_attns=True, seq_tile=None):
    del mask  # reference forward overwrites the masked product -> never read
    B, S, E = user_behavior.shape
    f1 = params["w1"].shape[1]
    f2 = params["w2"].shape[1]

    kind = _device_kind()
    is_v5 = "v5" in kind          # v5e VPU/EUP have no bf16 datapath
    is_v7 = "v7" in kind          # 2 TensorCores/chip, 64 MiB VMEM per TC
    use_bf16_ew = not is_v5
    min_tiles = 2 if is_v7 else 1

    vmem_cap = _vmem_capacity_bytes()
    vmem_limit = min(int(0.85 * vmem_cap), 112 << 20)

    # Explicit per-seq-row VMEM working set (generous over-estimate):
    #   ub f32 double-buffered (8E) + bf16/f32 concat temps (16E)
    #   + h1/h2 with Dice temps (12*F1 + 12*F2) + attn out double-buffered.
    bytes_per_row = B * (8 * E + 16 * E + 12 * f1 + 12 * f2 + 16)
    budget = max(1 << 20, int(0.6 * vmem_cap) - (2 << 20))   # headroom
    rows_budget = max(8, ((budget // bytes_per_row) // 8) * 8)

    tS, n_tiles, S_pad = _choose_tiling(S, rows_budget, min_tiles, seq_tile)

    ub = user_behavior
    if S_pad != S:
        # Zero rows: exact for the seq-sum; attn rows for padding are sliced off.
        ub = jnp.pad(ub, ((0, 0), (0, S_pad - S), (0, 0)))

    grid = (n_tiles,)
    ub_spec = pl.BlockSpec((B, tS, E), lambda s: (0, s, 0))
    pooled_spec = pl.BlockSpec((1, B, E), lambda s: (s, 0, 0))
    cparams = pltpu.CompilerParams(dimension_semantics=("parallel",),
                                   vmem_limit_bytes=vmem_limit)

    if not compute_attns:
        pooled_parts = pl.pallas_call(
            _pooled_only_kernel,
            out_shape=jax.ShapeDtypeStruct((n_tiles, B, E), jnp.float32),
            grid=grid,
            in_specs=[ub_spec],
            out_specs=pooled_spec,
            compiler_params=cparams,
            cost_estimate=pl.CostEstimate(
                flops=int(B * S_pad * E),
                transcendentals=0,
                bytes_accessed=int(4 * B * (S_pad * E + n_tiles * E))),
        )(ub)
        return jnp.sum(pooled_parts, axis=0), None

    # ---- weight prep (f32 sums before the bf16 cast; W1 decomposed row-wise:
    #      [q, ub, q-ub, q*ub] @ W1 == q@(Wq+Wd) + ub@(Wu-Wd) + (q*ub)@Wp) ----
    w1 = params["w1"]
    wq = w1[:E] + w1[2 * E:3 * E]                       # (E, F1) f32
    wu = w1[E:2 * E] - w1[2 * E:3 * E]                  # (E, F1) f32
    wp = w1[3 * E:]                                     # (E, F1) f32
    hq_b1 = query_ad.reshape(B, E) @ wq + params["b1"]  # (B, F1) f32 (hoisted)
    w_up = jnp.concatenate([wu, wp], axis=0).astype(jnp.bfloat16)   # (2E, F1)
    w2 = params["w2"].astype(jnp.bfloat16)                          # (F1, F2)
    w3_row = params["w3"].T                                         # (1, F2) f32
    b3 = params["b3"].reshape(1)                                    # (1,)

    smem = pltpu.MemorySpace.SMEM
    cost = pl.CostEstimate(
        flops=int(2 * B * S_pad * (2 * E * f1 + f1 * f2 + f2) + B * S_pad * E),
        transcendentals=int(B * S_pad * (f1 + f2)),
        bytes_accessed=int(4 * B * (S_pad * E + S_pad + n_tiles * E + E + f1)
                           + 2 * (2 * E * f1 + f1 * f2)))

    pooled_parts, attn_tiles = pl.pallas_call(
        _make_attention_kernel(use_bf16_ew),
        out_shape=(jax.ShapeDtypeStruct((n_tiles, B, E), jnp.float32),
                   jax.ShapeDtypeStruct((n_tiles, B, tS), jnp.float32)),
        grid=grid,
        in_specs=[
            pl.BlockSpec((B, 1, E), lambda s: (0, 0, 0)),    # query_ad (full)
            ub_spec,                                         # user_behavior tile
            pl.BlockSpec((B, f1), lambda s: (0, 0)),         # hq_b1 (hoisted)
            pl.BlockSpec((2 * E, f1), lambda s: (0, 0)),     # [wu; wp] fused
            pl.BlockSpec(memory_space=smem),                 # alpha1 (scalar)
            pl.BlockSpec((f1, f2), lambda s: (0, 0)),        # w2
            pl.BlockSpec((1, f2), lambda s: (0, 0)),         # b2
            pl.BlockSpec(memory_space=smem),                 # alpha2 (scalar)
            pl.BlockSpec((1, f2), lambda s: (0, 0)),         # w3 row
            pl.BlockSpec(memory_space=smem),                 # b3 (scalar)
        ],
        out_specs=(pooled_spec,
                   pl.BlockSpec((1, B, tS), lambda s: (s, 0, 0))),
        compiler_params=cparams,
        cost_estimate=cost,
    )(query_ad, ub, hq_b1, w_up, params["alpha1"],
      w2, params["b2"], params["alpha2"], w3_row, b3)

    pooled = jnp.sum(pooled_parts, axis=0)                          # (B, E)
    attns = attn_tiles.transpose(1, 0, 2).reshape(B, S_pad, 1)[:, :S]
    return pooled, attns


def init_params(key, embedding_dim, fc_dims=(32, 16)):
    """Deterministic synthetic init mirroring nn.Linear default (U[-1/sqrt(fan_in), ..])."""
    dims = [embedding_dim * 4] + list(fc_dims) + [1]
    params = {}
    keys = jax.random.split(key, 2 * (len(dims) - 1))
    for i in range(len(dims) - 1):
        fan_in, fan_out = dims[i], dims[i + 1]
        bound = 1.0 / (fan_in ** 0.5)
        params[f"w{i+1}"] = jax.random.uniform(
            keys[2 * i], (fan_in, fan_out), jnp.float32, -bound, bound)
        params[f"b{i+1}"] = jax.random.uniform(
            keys[2 * i + 1], (1, fan_out), jnp.float32, -bound, bound)
    # Dice alpha parameters start at zero, as in the PyTorch module.
    params["alpha1"] = jnp.zeros((1,), jnp.float32)
    params["alpha2"] = jnp.zeros((1,), jnp.float32)
    return params


def _reference(query_ad, user_behavior, params):
    """Pure-JAX f32 reference of the PyTorch forward (for validation)."""
    B, S, E = user_behavior.shape
    q = jnp.broadcast_to(query_ad, (B, S, E))
    x = jnp.concatenate([q, user_behavior, q - user_behavior, q * user_behavior], -1)

    def dice(x, alpha):
        mean = x.mean(axis=0, keepdims=True)
        var = jnp.sum((x - mean) ** 2, axis=0, keepdims=True) / (x.shape[0] - 1)
        p = jax.nn.sigmoid((x - mean) / jnp.sqrt(var + _EPS))
        return alpha * x * (1.0 - p) + x * p

    h = dice(x @ params["w1"] + params["b1"], params["alpha1"][0])
    h = dice(h @ params["w2"] + params["b2"], params["alpha2"][0])
    attns = h @ params["w3"] + params["b3"]
    pooled = user_behavior.sum(axis=1)
    return pooled, attns


if __name__ == "__main__":
    key = jax.random.PRNGKey(0)
    kq, kb, kb2, kp = jax.random.split(key, 4)

    B, S, E = 4, 8, 32
    query_ad = jax.random.normal(kq, (B, 1, E), dtype=jnp.float32)
    user_behavior = jax.random.normal(kb, (B, S, E), dtype=jnp.float32)
    lengths = jnp.array([8, 5, 3, 6])
    mask = (jnp.arange(S)[None, :, None] < lengths[:, None, None]).astype(jnp.float32)
    params = init_params(kp, E)

    out, attns = attention_pooling(query_ad, user_behavior, mask, params)
    jax.block_until_ready((out, attns))
    assert out.shape == (B, E)
    assert attns.shape == (B, S, 1)

    ref_out, ref_attns = _reference(query_ad, user_behavior, params)
    # Pooled output is an exact f32 path (reference forward returns sum over seq).
    assert jnp.allclose(out, ref_out, atol=1e-5), "pooled output mismatch"
    # Attention MLP uses bf16 MXU operands -> loose tolerance vs f32 reference.
    assert jnp.allclose(attns, ref_attns, atol=5e-2, rtol=5e-2), "attn mismatch"

    # Multi-tile + ragged-S (zero-padding) path.
    S2 = 20
    ub2 = jax.random.normal(kb2, (B, S2, E), dtype=jnp.float32)
    out2, attns2 = attention_pooling(query_ad, ub2, None, params, seq_tile=8)
    jax.block_until_ready((out2, attns2))
    ref2_out, ref2_attns = _reference(query_ad, ub2, params)
    assert out2.shape == (B, E) and attns2.shape == (B, S2, 1)
    assert jnp.allclose(out2, ref2_out, atol=1e-5), "tiled pooled mismatch"
    assert jnp.allclose(attns2, ref2_attns, atol=5e-2, rtol=5e-2), "tiled attn mismatch"

    # Fast path: skip the attention MLP (the module only returns the seq-sum).
    out3, attns3 = attention_pooling(query_ad, user_behavior, mask, params,
                                     compute_attns=False)
    jax.block_until_ready(out3)
    assert attns3 is None
    assert jnp.allclose(out3, ref_out, atol=1e-5), "fast-path pooled mismatch"

    print("KERNEL_OK")
</pallas_src>

<mosaic_0001>
module attributes {stable_mosaic.version = 11 : i64} {
  func.func @kernel(%arg0: i32, %arg1: memref<4x1x32xf32, #tpu.memory_space<vmem>>, %arg2: memref<4x8x32xf32, #tpu.memory_space<vmem>>, %arg3: memref<4x32xf32, #tpu.memory_space<vmem>>, %arg4: memref<64x32xbf16, #tpu.memory_space<vmem>>, %arg5: memref<1xf32, #tpu.memory_space<smem>>, %arg6: memref<32x16xbf16, #tpu.memory_space<vmem>>, %arg7: memref<1x16xf32, #tpu.memory_space<vmem>>, %arg8: memref<1xf32, #tpu.memory_space<smem>>, %arg9: memref<1x16xf32, #tpu.memory_space<vmem>>, %arg10: memref<1xf32, #tpu.memory_space<smem>>, %arg11: memref<1x4x32xf32, #tpu.memory_space<vmem>>, %arg12: memref<1x4x8xf32, #tpu.memory_space<vmem>>) attributes {dimension_semantics = [#tpu.dimension_semantics<parallel>], iteration_bounds = array<i64: 1>, scalar_prefetch = 0 : i64, scratch_operands = 0 : i64, tpu.core_type = #tpu.core_type<tc>, window_params = [{pipeline_mode = #tpu.pipeline_mode<synchronous>, transform_indices = @transform_0, window_bounds = array<i64: 4, 1, 32>}, {transform_indices = @transform_1, window_bounds = array<i64: 4, 8, 32>}, {pipeline_mode = #tpu.pipeline_mode<synchronous>, transform_indices = @transform_2, window_bounds = array<i64: 4, 32>}, {pipeline_mode = #tpu.pipeline_mode<synchronous>, transform_indices = @transform_3, window_bounds = array<i64: 64, 32>}, {transform_indices = @transform_4, window_bounds = array<i64: 1>}, {pipeline_mode = #tpu.pipeline_mode<synchronous>, transform_indices = @transform_5, window_bounds = array<i64: 32, 16>}, {pipeline_mode = #tpu.pipeline_mode<synchronous>, transform_indices = @transform_6, window_bounds = array<i64: 1, 16>}, {transform_indices = @transform_7, window_bounds = array<i64: 1>}, {pipeline_mode = #tpu.pipeline_mode<synchronous>, transform_indices = @transform_8, window_bounds = array<i64: 1, 16>}, {transform_indices = @transform_9, window_bounds = array<i64: 1>}, {transform_indices = @transform_10, window_bounds = array<i64: 1, 4, 32>}, {transform_indices = @transform_11, window_bounds = array<i64: 1, 4, 8>}]} {
    %c0 = arith.constant 0 : index
    %c0_0 = arith.constant 0 : index
    %c0_1 = arith.constant 0 : index
    %0 = vector.load %arg1[%c0, %c0_0, %c0_1] : memref<4x1x32xf32, #tpu.memory_space<vmem>>, vector<4x1x32xf32>
    %c0_2 = arith.constant 0 : index
    %c0_3 = arith.constant 0 : index
    %c0_4 = arith.constant 0 : index
    %1 = vector.load %arg2[%c0_2, %c0_3, %c0_4] : memref<4x8x32xf32, #tpu.memory_space<vmem>>, vector<4x8x32xf32>
    %cst = arith.constant dense<0.000000e+00> : vector<4x32xf32>
    %2 = vector.multi_reduction <add>, %1, %cst [1] : vector<4x8x32xf32> to vector<4x32xf32>
    %c0_5 = arith.constant 0 : index
    %c0_6 = arith.constant 0 : index
    %c0_7 = arith.constant 0 : index
    %3 = vector.load %arg11[%c0_5, %c0_6, %c0_7] : memref<1x4x32xf32, #tpu.memory_space<vmem>>, vector<1x4x32xf32>
    %4 = vector.shape_cast %3 : vector<1x4x32xf32> to vector<4x32xf32>
    %5 = vector.shape_cast %2 : vector<4x32xf32> to vector<1x4x32xf32>
    tpu.vector_store %arg11[%c0_5, %c0_6, %c0_7], %5 {strides = array<i32>} : memref<1x4x32xf32, #tpu.memory_space<vmem>>, vector<1x4x32xf32>,
    %6 = arith.truncf %1 : vector<4x8x32xf32> to vector<4x8x32xbf16>
    %7 = arith.truncf %0 : vector<4x1x32xf32> to vector<4x1x32xbf16>
    %8 = vector.broadcast %7 : vector<4x1x32xbf16> to vector<4x8x32xbf16>
    %9 = arith.mulf %8, %6 : vector<4x8x32xbf16>
    %10 = tpu.concatenate %6, %9 in 2 : vector<4x8x32xbf16>, vector<4x8x32xbf16> -> vector<4x8x64xbf16>
    %11 = vector.shape_cast %10 : vector<4x8x64xbf16> to vector<32x64xbf16>
    %c0_8 = arith.constant 0 : index
    %c0_9 = arith.constant 0 : index
    %12 = vector.load %arg4[%c0_8, %c0_9] : memref<64x32xbf16, #tpu.memory_space<vmem>>, vector<64x32xbf16>
    %cst_10 = arith.constant dense<0.000000e+00> : vector<32x32xf32>
    %13 = tpu.matmul %11, %12, %cst_10 {dimension_numbers = #tpu.dot_dimension_numbers<[1], [0], [0], [1], [0, 0, 1, 1], [], []>} : vector<32x64xbf16>, vector<64x32xbf16>, vector<32x32xf32> -> vector<32x32xf32>
    %14 = vector.shape_cast %13 : vector<32x32xf32> to vector<4x8x32xf32>
    %c0_11 = arith.constant 0 : index
    %c0_12 = arith.constant 0 : index
    %15 = vector.load %arg3[%c0_11, %c0_12] : memref<4x32xf32, #tpu.memory_space<vmem>>, vector<4x32xf32>
    %16 = vector.shape_cast %15 : vector<4x32xf32> to vector<4x1x32xf32>
    %17 = vector.broadcast %16 : vector<4x1x32xf32> to vector<4x8x32xf32>
    %18 = arith.addf %14, %17 : vector<4x8x32xf32>
    %c0_13 = arith.constant 0 : index
    %19 = memref.load %arg5[%c0_13] : memref<1xf32, #tpu.memory_space<smem>>
    %cst_14 = arith.constant dense<0.000000e+00> : vector<8x32xf32>
    %20 = vector.multi_reduction <add>, %18, %cst_14 [0] : vector<4x8x32xf32> to vector<8x32xf32>
    %21 = vector.shape_cast %20 : vector<8x32xf32> to vector<1x8x32xf32>
    %cst_15 = arith.constant 4.000000e+00 : f32
    %22 = vector.broadcast %cst_15 : f32 to vector<1x8x32xf32>
    %23 = arith.divf %21, %22 : vector<1x8x32xf32>
    %24 = vector.broadcast %23 : vector<1x8x32xf32> to vector<4x8x32xf32>
    %25 = arith.subf %18, %24 : vector<4x8x32xf32>
    %26 = arith.mulf %25, %25 : vector<4x8x32xf32>
    %cst_16 = arith.constant dense<0.000000e+00> : vector<8x32xf32>
    %27 = vector.multi_reduction <add>, %26, %cst_16 [0] : vector<4x8x32xf32> to vector<8x32xf32>
    %28 = vector.shape_cast %27 : vector<8x32xf32> to vector<1x8x32xf32>
    %cst_17 = arith.constant 3.000000e+00 : f32
    %29 = vector.broadcast %cst_17 : f32 to vector<1x8x32xf32>
    %30 = arith.divf %28, %29 : vector<1x8x32xf32>
    %31 = vector.broadcast %23 : vector<1x8x32xf32> to vector<4x8x32xf32>
    %32 = arith.subf %18, %31 : vector<4x8x32xf32>
    %cst_18 = arith.constant 9.99999971E-10 : f32
    %33 = vector.broadcast %cst_18 : f32 to vector<1x8x32xf32>
    %34 = arith.addf %30, %33 : vector<1x8x32xf32>
    %35 = math.rsqrt %34 : vector<1x8x32xf32>
    %36 = vector.broadcast %35 : vector<1x8x32xf32> to vector<4x8x32xf32>
    %37 = arith.mulf %32, %36 : vector<4x8x32xf32>
    %38 = arith.negf %37 : vector<4x8x32xf32>
    %39 = math.exp %38 : vector<4x8x32xf32>
    %cst_19 = arith.constant 1.000000e+00 : f32
    %40 = vector.broadcast %cst_19 : f32 to vector<4x8x32xf32>
    %41 = arith.addf %40, %39 : vector<4x8x32xf32>
    %42 = arith.divf %40, %41 : vector<4x8x32xf32>
    %cst_20 = arith.constant 1.000000e+00 : f32
    %43 = arith.subf %cst_20, %19 : f32
    %44 = vector.broadcast %43 : f32 to vector<4x8x32xf32>
    %45 = arith.mulf %44, %42 : vector<4x8x32xf32>
    %46 = vector.broadcast %19 : f32 to vector<4x8x32xf32>
    %47 = arith.addf %46, %45 : vector<4x8x32xf32>
    %48 = arith.mulf %18, %47 : vector<4x8x32xf32>
    %49 = vector.shape_cast %48 : vector<4x8x32xf32> to vector<32x32xf32>
    %50 = arith.truncf %49 : vector<32x32xf32> to vector<32x32xbf16>
    %c0_21 = arith.constant 0 : index
    %c0_22 = arith.constant 0 : index
    %51 = vector.load %arg6[%c0_21, %c0_22] : memref<32x16xbf16, #tpu.memory_space<vmem>>, vector<32x16xbf16>
    %cst_23 = arith.constant dense<0.000000e+00> : vector<32x16xf32>
    %52 = tpu.matmul %50, %51, %cst_23 {dimension_numbers = #tpu.dot_dimension_numbers<[1], [0], [0], [1], [0, 0, 1, 1], [], []>} : vector<32x32xbf16>, vector<32x16xbf16>, vector<32x16xf32> -> vector<32x16xf32>
    %53 = vector.shape_cast %52 : vector<32x16xf32> to vector<4x8x16xf32>
    %c0_24 = arith.constant 0 : index
    %c0_25 = arith.constant 0 : index
    %54 = vector.load %arg7[%c0_24, %c0_25] : memref<1x16xf32, #tpu.memory_space<vmem>>, vector<1x16xf32>
    %55 = vector.shape_cast %54 : vector<1x16xf32> to vector<1x1x16xf32>
    %56 = vector.broadcast %55 : vector<1x1x16xf32> to vector<4x8x16xf32>
    %57 = arith.addf %53, %56 : vector<4x8x16xf32>
    %c0_26 = arith.constant 0 : index
    %58 = memref.load %arg8[%c0_26] : memref<1xf32, #tpu.memory_space<smem>>
    %cst_27 = arith.constant dense<0.000000e+00> : vector<8x16xf32>
    %59 = vector.multi_reduction <add>, %57, %cst_27 [0] : vector<4x8x16xf32> to vector<8x16xf32>
    %60 = vector.shape_cast %59 : vector<8x16xf32> to vector<1x8x16xf32>
    %cst_28 = arith.constant 4.000000e+00 : f32
    %61 = vector.broadcast %cst_28 : f32 to vector<1x8x16xf32>
    %62 = arith.divf %60, %61 : vector<1x8x16xf32>
    %63 = vector.broadcast %62 : vector<1x8x16xf32> to vector<4x8x16xf32>
    %64 = arith.subf %57, %63 : vector<4x8x16xf32>
    %65 = arith.mulf %64, %64 : vector<4x8x16xf32>
    %cst_29 = arith.constant dense<0.000000e+00> : vector<8x16xf32>
    %66 = vector.multi_reduction <add>, %65, %cst_29 [0] : vector<4x8x16xf32> to vector<8x16xf32>
    %67 = vector.shape_cast %66 : vector<8x16xf32> to vector<1x8x16xf32>
    %cst_30 = arith.constant 3.000000e+00 : f32
    %68 = vector.broadcast %cst_30 : f32 to vector<1x8x16xf32>
    %69 = arith.divf %67, %68 : vector<1x8x16xf32>
    %70 = vector.broadcast %62 : vector<1x8x16xf32> to vector<4x8x16xf32>
    %71 = arith.subf %57, %70 : vector<4x8x16xf32>
    %cst_31 = arith.constant 9.99999971E-10 : f32
    %72 = vector.broadcast %cst_31 : f32 to vector<1x8x16xf32>
    %73 = arith.addf %69, %72 : vector<1x8x16xf32>
    %74 = math.rsqrt %73 : vector<1x8x16xf32>
    %75 = vector.broadcast %74 : vector<1x8x16xf32> to vector<4x8x16xf32>
    %76 = arith.mulf %71, %75 : vector<4x8x16xf32>
    %77 = arith.negf %76 : vector<4x8x16xf32>
    %78 = math.exp %77 : vector<4x8x16xf32>
    %cst_32 = arith.constant 1.000000e+00 : f32
    %79 = vector.broadcast %cst_32 : f32 to vector<4x8x16xf32>
    %80 = arith.addf %79, %78 : vector<4x8x16xf32>
    %81 = arith.divf %79, %80 : vector<4x8x16xf32>
    %cst_33 = arith.constant 1.000000e+00 : f32
    %82 = arith.subf %cst_33, %58 : f32
    %83 = vector.broadcast %82 : f32 to vector<4x8x16xf32>
    %84 = arith.mulf %83, %81 : vector<4x8x16xf32>
    %85 = vector.broadcast %58 : f32 to vector<4x8x16xf32>
    %86 = arith.addf %85, %84 : vector<4x8x16xf32>
    %87 = arith.mulf %57, %86 : vector<4x8x16xf32>
    %c0_34 = arith.constant 0 : index
    %c0_35 = arith.constant 0 : index
    %88 = vector.load %arg9[%c0_34, %c0_35] : memref<1x16xf32, #tpu.memory_space<vmem>>, vector<1x16xf32>
    %89 = vector.shape_cast %88 : vector<1x16xf32> to vector<1x1x16xf32>
    %90 = vector.broadcast %89 : vector<1x1x16xf32> to vector<4x8x16xf32>
    %91 = arith.mulf %87, %90 : vector<4x8x16xf32>
    %cst_36 = arith.constant dense<0.000000e+00> : vector<4x8xf32>
    %92 = vector.multi_reduction <add>, %91, %cst_36 [2] : vector<4x8x16xf32> to vector<4x8xf32>
    %c0_37 = arith.constant 0 : index
    %93 = memref.load %arg10[%c0_37] : memref<1xf32, #tpu.memory_space<smem>>
    %94 = vector.broadcast %93 : f32 to vector<4x8xf32>
    %95 = arith.addf %92, %94 : vector<4x8xf32>
    %c0_38 = arith.constant 0 : index
    %c0_39 = arith.constant 0 : index
    %c0_40 = arith.constant 0 : index
    %96 = vector.load %arg12[%c0_38, %c0_39, %c0_40] : memref<1x4x8xf32, #tpu.memory_space<vmem>>, vector<1x4x8xf32>
    %97 = vector.shape_cast %96 : vector<1x4x8xf32> to vector<4x8xf32>
    %98 = vector.shape_cast %95 : vector<4x8xf32> to vector<1x4x8xf32>
    tpu.vector_store %arg12[%c0_38, %c0_39, %c0_40], %98 {strides = array<i32>} : memref<1x4x8xf32, #tpu.memory_space<vmem>>, vector<1x4x8xf32>,
    return
  }
  func.func @transform_0(%arg0: i32) -> (i32, i32, i32) {
    %c0_i32 = arith.constant 0 : i32
    %c0_i32_0 = arith.constant 0 : i32
    %c0_i32_1 = arith.constant 0 : i32
    %c0_i32_2 = arith.constant 0 : i32
    return %c0_i32, %c0_i32_0, %c0_i32_1 : i32, i32, i32
  }
  func.func @transform_1(%arg0: i32) -> (i32, i32, i32) {
    %c0_i32 = arith.constant 0 : i32
    %c0_i32_0 = arith.constant 0 : i32
    %c0_i32_1 = arith.constant 0 : i32
    return %c0_i32, %arg0, %c0_i32_0 : i32, i32, i32
  }
  func.func @transform_2(%arg0: i32) -> (i32, i32) {
    %c0_i32 = arith.constant 0 : i32
    %c0_i32_0 = arith.constant 0 : i32
    %c0_i32_1 = arith.constant 0 : i32
    return %c0_i32, %c0_i32_0 : i32, i32
  }
  func.func @transform_3(%arg0: i32) -> (i32, i32) {
    %c0_i32 = arith.constant 0 : i32
    %c0_i32_0 = arith.constant 0 : i32
    %c0_i32_1 = arith.constant 0 : i32
    return %c0_i32, %c0_i32_0 : i32, i32
  }
  func.func @transform_4(%arg0: i32) -> i32 {
    %c0_i32 = arith.constant 0 : i32
    %c0_i32_0 = arith.constant 0 : i32
    return %c0_i32 : i32
  }
  func.func @transform_5(%arg0: i32) -> (i32, i32) {
    %c0_i32 = arith.constant 0 : i32
    %c0_i32_0 = arith.constant 0 : i32
    %c0_i32_1 = arith.constant 0 : i32
    return %c0_i32, %c0_i32_0 : i32, i32
  }
  func.func @transform_6(%arg0: i32) -> (i32, i32) {
    %c0_i32 = arith.constant 0 : i32
    %c0_i32_0 = arith.constant 0 : i32
    %c0_i32_1 = arith.constant 0 : i32
    return %c0_i32, %c0_i32_0 : i32, i32
  }
  func.func @transform_7(%arg0: i32) -> i32 {
    %c0_i32 = arith.constant 0 : i32
    %c0_i32_0 = arith.constant 0 : i32
    return %c0_i32 : i32
  }
  func.func @transform_8(%arg0: i32) -> (i32, i32) {
    %c0_i32 = arith.constant 0 : i32
    %c0_i32_0 = arith.constant 0 : i32
    %c0_i32_1 = arith.constant 0 : i32
    return %c0_i32, %c0_i32_0 : i32, i32
  }
  func.func @transform_9(%arg0: i32) -> i32 {
    %c0_i32 = arith.constant 0 : i32
    %c0_i32_0 = arith.constant 0 : i32
    return %c0_i32 : i32
  }
  func.func @transform_10(%arg0: i32) -> (i32, i32, i32) {
    %c0_i32 = arith.constant 0 : i32
    %c0_i32_0 = arith.constant 0 : i32
    %c0_i32_1 = arith.constant 0 : i32
    return %arg0, %c0_i32, %c0_i32_0 : i32, i32, i32
  }
  func.func @transform_11(%arg0: i32) -> (i32, i32, i32) {
    %c0_i32 = arith.constant 0 : i32
    %c0_i32_0 = arith.constant 0 : i32
    %c0_i32_1 = arith.constant 0 : i32
    return %arg0, %c0_i32, %c0_i32_0 : i32, i32, i32
  }
}

</mosaic_0001>

<bundles_post_ra>
// kernel: tpu_custom_call.1
= control target key start
LH: loop header
LB: loop body
LE: loop exit
PB: predicated region body
PF: predicated region fallthrough
CT: control target
= control target key end

     0   :  { %20 = vsyncpa [#allocation6], 0  ;;  %v104_v1 = vlaneseq  ;;  %s1009_s0 = inlined_call_operand.vmem [shape: f32[4,1,32], index: 0, kind: input, shape index: {}]   ;;  %s1010_s1 = inlined_call_operand.vmem [shape: f32[4,8,32], index: 1, kind: input, shape index: {}]   ;;  %s1011_s2 = inlined_call_operand.vmem [shape: f32[4,32], index: 2, kind: input, shape index: {}]   ;;  %s1012_s3 = inlined_call_operand.vmem [shape: bf16[64,32], index: 3, kind: input, shape index: {}]   ;;  %s1013_s4 = inlined_call_operand.<no memory space> [shape: f32[1], index: 4, kind: input, shape index: {}]   ;;  %s1014_s5 = inlined_call_operand.vmem [shape: bf16[32,16], index: 5, kind: input, shape index: {}]   ;;  %s1015_s6 = inlined_call_operand.vmem [shape: f32[1,16], index: 6, kind: input, shape index: {}]   ;;  %s1016_s7 = inlined_call_operand.<no memory space> [shape: f32[1], index: 7, kind: input, shape index: {}]   ;;  %s1017_s8 = inlined_call_operand.vmem [shape: f32[1,16], index: 8, kind: input, shape index: {}]   ;;  %s1018_s9 = inlined_call_operand.<no memory space> [shape: f32[1], index: 9, kind: input, shape index: {}]   ;;  %s1019_s10 = inlined_call_operand.hbm [shape: f32[1,4,32], index: 10, kind: output, shape index: {0}]   ;;  %s1020_s11 = inlined_call_operand.hbm [shape: f32[1,4,8], index: 11, kind: output, shape index: {1}]  }
   0x1   :  { %v45_v0 = vld [vmem:[%s1009_s0 + $0x2] sm:$0x1]  ;;  %v830_v2 = vld [vmem:[%s1010_s1 + $0x10] sm:$0xff]  ;;  %v43_v4 = vld [vmem:[%s1009_s0] sm:$0x1] }
   0x2   :  { %v99_v3 = vpack.c.bf16 %v45_v0, %v45_v0  ;;  %v836_v5 = vshrl.u32 %v104_v1, 7  ;;  %v841_v6 = vld [vmem:[%s1010_s1] sm:$0xff]  ;;  %v849_v8 = vld [vmem:[%s1010_s1 + $0x18] sm:$0xff]  ;;  %v97_v10 = vpack.c.bf16 %v43_v4, %v43_v4  ;;  %v95_v12 = vpack.c.bf16 %v830_v2, %v830_v2  ;;  %v675_v15 = vld [vmem:[%s1012_s3 + $0x10] sm:$0xff]  }
   0x3   :  { %v46_v7 = vld [vmem:[%s1009_s0 + $0x3] sm:$0x1]  ;;  %v44_v11 = vld [vmem:[%s1009_s0 + $0x1] sm:$0x1]  ;;  %v674_v14 = vld [vmem:[%s1012_s3 + $0x18] sm:$0xff]   ;;  %v93_v16 = vpack.c.bf16 %v841_v6, %v841_v6  ;;  %v96_v22 = vpack.c.bf16 %v849_v8, %v849_v8 }
   0x4   :  { %v116_v9 = vpack.i.b16 %v99_v3, %v99_v3  ;;  %v857_v13 = vsub.s32 0, %v836_v5  ;;  %v102_v17 = vpack.i.b16 %v97_v10, %v97_v10  ;;  %v100_v18 = vpack.c.bf16 %v46_v7, %v46_v7  ;;  %v871_v20 = vld [vmem:[%s1010_s1 + $0x8] sm:$0xff]  ;;  %650 = vmatprep.subr.bf16.mxu0 %v674_v14 }
   0x5   :  { %v98_v24 = vpack.c.bf16 %v44_v11, %v44_v11  ;;  %651 = vmatpush3.bf16.msra.mxu0 %v674_v14  ;;  %v676_v26 = vld [vmem:[%s1012_s3 + $0x8] sm:$0xff]   ;;  %v94_v29 = vpack.c.bf16 %v871_v20, %v871_v20 }
   0x6   :  { %v121_v19 = vrot.slane %v116_v9, %v857_v13  ;;  %v107_v21 = vrot.slane %v102_v17, %v857_v13  ;;  %v123_v23 = vpack.i.b16 %v100_v18, %v100_v18  ;;  %652 = vmatprep.subr.bf16.mxu0 %v675_v15 }
   0x7   :  { %v109_v30 = vpack.i.b16 %v98_v24, %v98_v24 }
   0x8   :  { %v131_v25 = vmul.bf16 %v121_v19, %v95_v12  ;;  %v129_v27 = vmul.bf16 %v107_v21, %v93_v16  ;;  %v128_v28 = vrot.slane %v123_v23, %v857_v13 }
   0x9   :  { %21 = vsyncpa [#allocation8], 0  ;;  %s760_s1 = smov 32   ;;  %v114_v32 = vrot.slane %v109_v30, %v857_v13  ;;  %653 = vmatpush3.bf16.msra.mxu0 %v675_v15  ;;  %v677_v33 = vld [vmem:[%s1012_s3] sm:$0xff]   ;;  %vm51_vm0 = vcmask 261120   ;;  %vm199_vm1 = vcmask 523264  }
   0xa   :  { %141 = vrot.lane.b32.xlu1 %v131_v25, %s760_s1  ;;  %137 = vrot.lane.b32.xlu0 %v129_v27, %s760_s1  ;;  %v132_v31 = vmul.bf16 %v128_v28, %v96_v22  ;;  %v678_v45 = vld [vmem:[%s1014_s5 + $0x8] sm:$0xff]   ;;  %v679_v46 = vld [vmem:[%s1014_s5] sm:$0xff]   ;;  %v761_v47 = vmov 1966171168   ;;  %s362_s26 = ssub.f32 1.0, %s1013_s4  ;;  %vm462_vm2 = vcmask 130048  }
   0xb   :  { %654 = vmatprep.subr.bf16.mxu0 %v676_v26  ;;  %v130_v34 = vmul.bf16 %v114_v32, %v94_v29  ;;  %662 = vmatprep.subr.bf16.mxu1 %v678_v45  ;;  %v266_v48 = vunpack.c.l.s4 %v761_v47  ;;  %v625_v51 = vld.sshfl [vmem:[%s1011_s2] sm:$0x33 pattern:$0x75316420]  ;;  %s517_s12 = ssub.f32 1.0, %s1016_s7  ;;  %vm84_vm3 = vcmask 1041409  }
   0xc   :  { %663 = vmatpush3.bf16.msra.mxu1 %v678_v45  ;;  %v264_v52 = vcombine.high %v625_v51, %v625_v51  ;;  %vm88_vm4 = vcmask 1043459   ;;  %vm86_vm5 = vcmask 1042434   ;;  %vm91_vm6 = vcmask 257024  }
   0xd   :  { %655 = vmatpush3.bf16.msra.mxu0 %v676_v26  ;;  %664 = vmatprep.subr.bf16.mxu1 %v679_v46  ;;  %v267_v49 = vunpack.c.0.s8 %v266_v48 }
   0xe   :  { %143 = vrot.lane.b32.xlu1 %v132_v31, %s760_s1  ;;  %139 = vrot.lane.b32.xlu0 %v130_v34, %s760_s1 }
   0xf   :  { %656 = vmatprep.subr.bf16.mxu0 %v677_v33  ;;  %v270_v50 = vsub.s32 %v267_v49, %v836_v5 }
  0x10   :  { %665 = vmatpush3.bf16.msra.mxu1 %v679_v46 }
  0x11   :  { %657 = vmatpush3.bf16.msra.mxu0 %v677_v33  ;;  %v271_v53 = vrot.slane %v625_v51, %v270_v50  ;;  %v278_v54 = vrot.slane %v264_v52, %v270_v50 }
  0x13   :  { %v279_v55 = vcombine.high %v271_v53, %v271_v53  ;;  %v284_v57 = vrot.slane %v271_v53, %v857_v13  ;;  %v280_v58 = vcombine.high %v278_v54, %v278_v54  ;;  %v288_v61 = vrot.slane %v278_v54, %v857_v13 }
  0x14   :  { %v363_v53 = vstv %s362_s26 }
  0x15   :  { %v292_v60 = vrot.slane %v279_v55, %v857_v13  ;;  %v296_v0 = vrot.slane %v280_v58, %v857_v13  ;;  %v368_v55 = vstv %s1013_s4 }
  0x7c   :  { %v142_v35 = vpop.permute.xlu1 %141  ;;  %v138_v36 = vpop.permute.xlu0 %137 }
  0x7d   :  { %v153_v38 = vsel %vm51_vm0, %v95_v12, %v142_v35  ;;  %v147_v41 = vsel %vm51_vm0, %v93_v16, %v138_v36 }
  0x80   :  { %v144_v37 = vpop.permute.xlu1 %143  ;;  %v140_v40 = vpop.permute.xlu0 %139 }
  0x81   :  { %v156_v39 = vsel %vm51_vm0, %v96_v22, %v144_v37  ;;  %v150_v43 = vsel %vm51_vm0, %v94_v29, %v140_v40 }
  0x82   :  { %v618_v42 = vcombine.low %v153_v38, %v156_v39  ;;  %v617_v44 = vcombine.low %v147_v41, %v150_v43 }
  0x84   :  { %658 = vmatprep.mubr.msk.bf16.mxu0 %vm199_vm1, %v617_v44 }
  0x85   :  { %659 = vmatmul.mubr.msk.bf16.vlgmr.msra.gmra.mxu0 %vm199_vm1, %v618_v42 }
 0x145   :  { %v660_v56 = vpop.f32.mrf.mxu0 }
 0x146   :  { %v906_v4 = vadd.f32 %v660_v56, %v292_v60 }
 0x147   :  { %v240_v59 = vpop.f32.mrf.mxu0 }
 0x148   :  { %v903_v63 = vadd.f32 %v284_v57, %v240_v59  ;;  %v309_v14 = vsel %vm51_vm0, %v906_v4, 0.0 }
 0x149   :  { %v661_v62 = vpop.f32.mrf.mxu0 }
 0x14a   :  { %v306_v9 = vsel %vm51_vm0, %v903_v63, 0.0  ;;  %v912_v10 = vadd.f32 %v661_v62, %v296_v0 }
 0x14b   :  { %v243_v3 = vpop.f32.mrf.mxu0 }
 0x14c   :  { %v908_v7 = vadd.f32 %v288_v61, %v243_v3  ;;  %v311_v13 = vsel %vm51_vm0, %v912_v10, 0.0 }
 0x14e   :  { %v307_v11 = vsel %vm51_vm0, %v908_v7, 0.0 }
 0x14f   :  { %v308_v12 = vadd.f32 %v307_v11, %v306_v9 }
 0x151   :  { %v310_v15 = vadd.f32 %v309_v14, %v308_v12 }
 0x153   :  { %v312_v16 = vadd.f32 %v311_v13, %v310_v15 }
 0x155   :  { %v314_v17 = vmul.f32 0.25, %v312_v16 }
 0x157   :  { %v315_v18 = vsub.f32 %v903_v63, %v314_v17  ;;  %v316_v19 = vsub.f32 %v908_v7, %v314_v17  ;;  %v317_v21 = vsub.f32 %v906_v4, %v314_v17  ;;  %v318_v22 = vsub.f32 %v912_v10, %v314_v17 }
 0x159   :  { %v319_v23 = vmul.f32 %v315_v18, %v315_v18  ;;  %v320_v24 = vmul.f32 %v316_v19, %v316_v19  ;;  %v321_v25 = vmul.f32 %v317_v21, %v317_v21  ;;  %v322_v26 = vmul.f32 %v318_v22, %v318_v22 }
 0x15b   :  { %v323_v27 = vsel %vm51_vm0, %v319_v23, 0.0  ;;  %v324_v28 = vsel %vm51_vm0, %v320_v24, 0.0  ;;  %v326_v30 = vsel %vm51_vm0, %v321_v25, 0.0  ;;  %v328_v32 = vsel %vm51_vm0, %v322_v26, 0.0 }
 0x15c   :  { %v325_v29 = vadd.f32 %v324_v28, %v323_v27 }
 0x15e   :  { %v327_v31 = vadd.f32 %v326_v30, %v325_v29 }
 0x160   :  { %v329_v33 = vadd.f32 %v328_v32, %v327_v31 }
 0x162   :  { %v331_v34 = vmul.f32 0.33333334, %v329_v33 }
 0x164   :  { %v332_v35 = vadd.f32 1e-09, %v331_v34 }
 0x166   :  { %680 = vrsqrt.f32 %v332_v35 }
 0x173   :  { %v681_v36 = vpop.eup %680 }
 0x174   :  { %v334_v37 = vmul.f32 %v681_v36, %v315_v18  ;;  %v335_v38 = vmul.f32 %v681_v36, %v316_v19  ;;  %v336_v39 = vmul.f32 %v681_v36, %v317_v21  ;;  %v337_v40 = vmul.f32 %v681_v36, %v318_v22 }
 0x176   :  { %v626_v41 = vmul.f32 -1.442695, %v334_v37  ;;  %v627_v42 = vmul.f32 -1.442695, %v335_v38  ;;  %v628_v43 = vmul.f32 -1.442695, %v336_v39 }
 0x177   :  { %v629_v44 = vmul.f32 -1.442695, %v337_v40 }
 0x178   :  { %682 = vpow2.f32 %v626_v41 }
 0x179   :  { %684 = vpow2.f32 %v627_v42 }
 0x17a   :  { %686 = vpow2.f32 %v628_v43 }
 0x17b   :  { %688 = vpow2.f32 %v629_v44 }
 0x185   :  { %v683_v45 = vpop.eup %682 }
 0x186   :  { %v685_v46 = vpop.eup %684  ;;  %v350_v47 = vadd.f32 1.0, %v683_v45 }
 0x187   :  { %v687_v48 = vpop.eup %686  ;;  %v351_v49 = vadd.f32 1.0, %v685_v46 }
 0x188   :  { %v689_v50 = vpop.eup %688  ;;  %v352_v51 = vadd.f32 1.0, %v687_v48  ;;  %690 = vrcp.f32 %v350_v47 }
 0x189   :  { %v353_v52 = vadd.f32 1.0, %v689_v50  ;;  %692 = vrcp.f32 %v351_v49 }
 0x18a   :  { %694 = vrcp.f32 %v352_v51 }
 0x18b   :  { %696 = vrcp.f32 %v353_v52 }
 0x195   :  { %v691_v54 = vpop.eup %690 }
 0x196   :  { %v693_v56 = vpop.eup %692  ;;  %v364_v57 = vmul.f32 %v691_v54, %v363_v53 }
 0x197   :  { %v695_v58 = vpop.eup %694  ;;  %v365_v59 = vmul.f32 %v693_v56, %v363_v53 }
 0x198   :  { %v697_v60 = vpop.eup %696  ;;  %v369_v61 = vadd.f32 %v368_v55, %v364_v57  ;;  %v366_v62 = vmul.f32 %v695_v58, %v363_v53 }
 0x199   :  { %v370_v0 = vadd.f32 %v368_v55, %v365_v59  ;;  %v367_v3 = vmul.f32 %v697_v60, %v363_v53 }
 0x19a   :  { %v373_v9 = vmul.f32 %v369_v61, %v903_v63  ;;  %v371_v11 = vadd.f32 %v368_v55, %v366_v62  ;;  %v634_v63 = vld [vmem:[%s1015_s6] ss:$0 sm:$0xff] }
 0x19b   :  { %v374_v12 = vmul.f32 %v370_v0, %v908_v7  ;;  %v372_v14 = vadd.f32 %v368_v55, %v367_v3 }
 0x19c   :  { %v375_v15 = vmul.f32 %v371_v11, %v906_v4  ;;  %v518_v11 = vstv %s517_s12 }
 0x19d   :  { %v377_v13 = vpack.c.bf16 %v374_v12, %v373_v9  ;;  %v376_v16 = vmul.f32 %v372_v14, %v912_v10  ;;  %v523_v14 = vstv %s1016_s7  ;;  %s762_s7 = smov [#allocation5]  }
 0x19f   :  { %666 = vmatprep.mubr.msk.bf16.mxu1 %vm51_vm0, %v377_v13  ;;  %v378_v17 = vpack.c.bf16 %v376_v16, %v375_v15 }
 0x1a1   :  { %667 = vmatmul.mubr.msk.bf16.vlgmr.msra.gmra.mxu1 %vm51_vm0, %v378_v17 }
 0x261   :  { %v668_v18 = vpop.f32.mrf.mxu1 }
 0x262   :  { %v945_v23 = vadd.f32 %v668_v18, %v634_v63 }
 0x263   :  { %v435_v19 = vpop.f32.mrf.mxu1 }
 0x264   :  { %v943_v22 = vadd.f32 %v634_v63, %v435_v19  ;;  %v466_v27 = vsel %vm462_vm2, %v945_v23, 0.0 }
 0x265   :  { %v669_v21 = vpop.f32.mrf.mxu1 }
 0x266   :  { %v463_v10 = vsel %vm462_vm2, %v943_v22, 0.0  ;;  %v951_v24 = vadd.f32 %v669_v21, %v634_v63 }
 0x267   :  { %v438_v7 = vpop.f32.mrf.mxu1 }
 0x268   :  { %v947_v4 = vadd.f32 %v634_v63, %v438_v7  ;;  %v468_v29 = vsel %vm462_vm2, %v951_v24, 0.0  ;;  %v639_v7 = vld [vmem:[%s1017_s8] ss:$0 sm:$0xff]  ;;  %s595_s8 = sshll.u32 %s762_s7, 4  ;;  %s596_s8 = int_to_ptr.vmem [resolvable:$true] %s595_s8 }
 0x269   :  { %s716_s16 = scalar_lea.vmem %s596_s8, 64  ;;  %p721_p1 = scmp.lt.s32.totalorder %s596_s8, %s596_s8 }
 0x26a   :  { %v464_v25 = vsel %vm462_vm2, %v947_v4, 0.0  ;;  %p717_p0 = scmp.ne.s32.totalorder %s596_s8, %s716_s16  ;;  %p722_p2 = scmp.lt.s32.totalorder %s716_s16, %s716_s16 }
 0x26b   :  { %v465_v26 = vadd.f32 %v464_v25, %v463_v10 }
 0x26c   :  { %p723_p3 = por %p722_p2, %p721_p1 }
 0x26d   :  { %v467_v28 = vadd.f32 %v466_v27, %v465_v26 }
 0x26e   :  { %p724_p4 = pnand %p723_p3, %p717_p0 }
 0x26f   :  { %v469_v30 = vadd.f32 %v468_v29, %v467_v28  ;;  %v52_v29 = vsel %vm51_vm0, %v841_v6, 0.0 }
 0x271   :  { %v470_v31 = vmul.f32 0.25, %v469_v30 }
 0x273   :  { %v471_v32 = vsub.f32 %v943_v22, %v470_v31  ;;  %v472_v33 = vsub.f32 %v947_v4, %v470_v31  ;;  %v473_v34 = vsub.f32 %v945_v23, %v470_v31  ;;  %v474_v35 = vsub.f32 %v951_v24, %v470_v31 }
 0x275   :  { %v475_v36 = vmul.f32 %v471_v32, %v471_v32  ;;  %v476_v37 = vmul.f32 %v472_v33, %v472_v33  ;;  %v477_v38 = vmul.f32 %v473_v34, %v473_v34  ;;  %v478_v39 = vmul.f32 %v474_v35, %v474_v35 }
 0x277   :  { %v479_v40 = vsel %vm462_vm2, %v475_v36, 0.0  ;;  %v480_v41 = vsel %vm462_vm2, %v476_v37, 0.0  ;;  %v482_v43 = vsel %vm462_vm2, %v477_v38, 0.0  ;;  %v484_v45 = vsel %vm462_vm2, %v478_v39, 0.0 }
 0x278   :  { %v481_v42 = vadd.f32 %v480_v41, %v479_v40  ;;  %v53_v36 = vrot.slane %v52_v29, 4 }
 0x27a   :  { %v483_v44 = vadd.f32 %v482_v43, %v481_v42  ;;  %v54_v40 = vadd.f32 %v53_v36, %v52_v29 }
 0x27c   :  { %v485_v46 = vadd.f32 %v484_v45, %v483_v44  ;;  %v55_v43 = vrot.slane %v54_v40, 2 }
 0x27e   :  { %v486_v47 = vmul.f32 0.33333334, %v485_v46  ;;  %v56_v46 = vadd.f32 %v55_v43, %v54_v40 }
 0x280   :  { %v487_v48 = vadd.f32 1e-09, %v486_v47 }
 0x282   :  { %698 = vrsqrt.f32 %v487_v48 }
 0x28f   :  { %v699_v49 = vpop.eup %698 }
 0x290   :  { %v489_v50 = vmul.f32 %v699_v49, %v471_v32  ;;  %v490_v51 = vmul.f32 %v699_v49, %v472_v33  ;;  %v491_v52 = vmul.f32 %v699_v49, %v473_v34  ;;  %v492_v53 = vmul.f32 %v699_v49, %v474_v35 }
 0x292   :  { %v635_v54 = vmul.f32 -1.442695, %v489_v50  ;;  %v636_v55 = vmul.f32 -1.442695, %v490_v51  ;;  %v637_v56 = vmul.f32 -1.442695, %v491_v52 }
 0x293   :  { %v638_v57 = vmul.f32 -1.442695, %v492_v53  ;;  %v57_v50 = vrot.slane %v56_v46, 1 }
 0x294   :  { %700 = vpow2.f32 %v635_v54 }
 0x295   :  { %702 = vpow2.f32 %v636_v55  ;;  %v58_v54 = vadd.f32 %v57_v50, %v56_v46 }
 0x296   :  { %704 = vpow2.f32 %v637_v56 }
 0x297   :  { %706 = vpow2.f32 %v638_v57 }
 0x2a1   :  { %v701_v58 = vpop.eup %700 }
 0x2a2   :  { %v703_v59 = vpop.eup %702  ;;  %v505_v60 = vadd.f32 1.0, %v701_v58 }
 0x2a3   :  { %v705_v61 = vpop.eup %704  ;;  %v506_v62 = vadd.f32 1.0, %v703_v59 }
 0x2a4   :  { %v707_v0 = vpop.eup %706  ;;  %708 = vrcp.f32 %v505_v60  ;;  %v507_v3 = vadd.f32 1.0, %v705_v61 }
 0x2a5   :  { %710 = vrcp.f32 %v506_v62  ;;  %v508_v9 = vadd.f32 1.0, %v707_v0 }
 0x2a6   :  { %712 = vrcp.f32 %v507_v3 }
 0x2a7   :  { %714 = vrcp.f32 %v508_v9 }
 0x2b1   :  { %v709_v12 = vpop.eup %708 }
 0x2b2   :  { %v711_v15 = vpop.eup %710  ;;  %v519_v13 = vmul.f32 %v709_v12, %v518_v11 }
 0x2b3   :  { %v713_v16 = vpop.eup %712  ;;  %v520_v17 = vmul.f32 %v711_v15, %v518_v11 }
 0x2b4   :  { %v715_v18 = vpop.eup %714  ;;  %v524_v19 = vadd.f32 %v523_v14, %v519_v13  ;;  %v521_v63 = vmul.f32 %v713_v16, %v518_v11 }
 0x2b5   :  { %v525_v21 = vadd.f32 %v523_v14, %v520_v17  ;;  %v522_v10 = vmul.f32 %v715_v18, %v518_v11 }
 0x2b6   :  { %v528_v25 = vmul.f32 %v524_v19, %v943_v22  ;;  %v526_v26 = vadd.f32 %v523_v14, %v521_v63  ;;  %v59_v22 = vsel %vm51_vm0, %v871_v20, 0.0 }
 0x2b7   :  { %v529_v27 = vmul.f32 %v525_v21, %v947_v4  ;;  %v527_v28 = vadd.f32 %v523_v14, %v522_v10  ;;  %v66_v4 = vsel %vm51_vm0, %v830_v2, 0.0  ;;  %v60_v6 = vrot.slane %v59_v22, 4 }
 0x2b8   :  { %v539_v30 = vmul.f32 %v639_v7, %v528_v25  ;;  %v530_v31 = vmul.f32 %v526_v26, %v945_v23  ;;  %v67_v39 = vrot.slane %v66_v4, 4 }
 0x2b9   :  { %v540_v32 = vmul.f32 %v639_v7, %v529_v27  ;;  %v531_v35 = vmul.f32 %v527_v28, %v951_v24  ;;  %v73_v24 = vsel %vm51_vm0, %v849_v8, 0.0  ;;  %v61_v41 = vadd.f32 %v60_v6, %v59_v22 }
 0x2ba   :  { %v543_v33 = vsel %vm462_vm2, %v539_v30, 0.0  ;;  %v541_v34 = vmul.f32 %v639_v7, %v530_v31  ;;  %v68_v42 = vadd.f32 %v67_v39, %v66_v4  ;;  %v74_v44 = vrot.slane %v73_v24, 4 }
 0x2bb   :  { %v546_v37 = vsel %vm462_vm2, %v540_v32, 0.0  ;;  %544 = vadd.xlane.f32.xlu0 %v543_v33  ;;  %v542_v38 = vmul.f32 %v639_v7, %v531_v35  ;;  %v62_v45 = vrot.slane %v61_v41, 2 }
 0x2bc   :  { %547 = vadd.xlane.f32.xlu1 %v546_v37  ;;  %v549_v23 = vsel %vm462_vm2, %v541_v34, 0.0  ;;  %v69_v2 = vrot.slane %v68_v42, 2  ;;  %v75_v47 = vadd.f32 %v74_v44, %v73_v24 }
 0x2bd   :  { %v552_v20 = vsel %vm462_vm2, %v542_v38, 0.0  ;;  %v63_v48 = vadd.f32 %v62_v45, %v61_v41 }
 0x2be   :  { %v70_v49 = vadd.f32 %v69_v2, %v68_v42  ;;  %v76_v51 = vrot.slane %v75_v47, 2 }
 0x2bf   :  { %550 = vadd.xlane.f32.xlu0 %v549_v23  ;;  %v64_v52 = vrot.slane %v63_v48, 1 }
 0x2c0   :  { %v77_v53 = vadd.f32 %v76_v51, %v75_v47  ;;  %v71_v55 = vrot.slane %v70_v49, 1 }
 0x2c1   :  { %v65_v8 = vadd.f32 %v64_v52, %v63_v48 }
 0x2c2   :  { %v78_v56 = vrot.slane %v77_v53, 1  ;;  %v72_v57 = vadd.f32 %v71_v55, %v70_v49 }
 0x2c3   :  { %553 = vadd.xlane.f32.xlu0 %v552_v20  ;;  %v85_v59 = vsel %vm84_vm3, %v65_v8, %v58_v54 }
 0x2c4   :  { %v79_v58 = vadd.f32 %v78_v56, %v77_v53  ;;  %v87_v60 = vsel %vm86_vm5, %v72_v57, %v85_v59 }
 0x2c6   :  { %v89_v61 = vsel %vm88_vm4, %v79_v58, %v87_v60 }
 0x2c7   :  { %92 = vst.msk [vmem:[#allocation5] sm:$0xf] %vm91_vm6, %v89_v61 }
 0x2c8   :  { %727 = shalt.err (!%p724_p4)
}
 0x2c9   :  { %598 = dma.vmem_to_hbm [thread:$0]  %s596_s8, 64, %s1019_s10, [#allocation6]   ;;  %v566_v62 = vand.u32 127, %v104_v1  ;;  %v556_v0 = vstv %s1018_s9  ;;  %vm587_vm7 = vcmask 60416  }
 0x2ca   :  { %s763_s10 = smov [#allocation7]  }
 0x2cb   :  { %v569_v11 = vsub.s32 %v566_v62, %v836_v5  ;;  %s605_s20 = sshll.u32 %s763_s10, 4  ;;  %s606_s20 = int_to_ptr.vmem [resolvable:$true] %s605_s20 }
 0x2cc   :  { %s736_s9 = scalar_lea.vmem %s606_s20, 64  ;;  %p741_p6 = scmp.lt.s32.totalorder %s606_s20, %s606_s20 }
 0x2cd   :  { %p737_p5 = scmp.ne.s32.totalorder %s606_s20, %s736_s9  ;;  %p742_p7 = scmp.lt.s32.totalorder %s736_s9, %s736_s9 }
 0x2cf   :  { %p743_p8 = por %p742_p7, %p741_p6 }
 0x2d1   :  { %p744_p9 = pnand %p743_p8, %p737_p5 }
 0x344   :  { %v545_v3 = vpop.xlane.xlu0 %544 }
 0x345   :  { %v548_v9 = vpop.xlane.xlu1 %547  ;;  %v557_v14 = vadd.f32 %v556_v0, %v545_v3 }
 0x346   :  { %v558_v12 = vadd.f32 %v556_v0, %v548_v9 }
 0x347   :  { %v570_v17 = vrot.slane %v557_v14, %v569_v11 }
 0x348   :  { %v551_v15 = vpop.xlane.xlu0 %550  ;;  %v574_v16 = vrot.slane %v558_v12, %v569_v11 }
 0x349   :  { %v559_v13 = vadd.f32 %v556_v0, %v551_v15 }
 0x34a   :  { %v583_v1 = vsel %vm84_vm3, %v574_v16, %v570_v17 }
 0x34b   :  { %v578_v18 = vrot.slane %v559_v13, %v569_v11 }
 0x34c   :  { %v554_v19 = vpop.xlane.xlu0 %553 }
 0x34d   :  { %v560_v63 = vadd.f32 %v556_v0, %v554_v19  ;;  %v584_v7 = vsel %vm86_vm5, %v578_v18, %v583_v1 }
 0x34f   :  { %v582_v21 = vrot.slane %v560_v63, %v569_v11 }
 0x351   :  { %v585_v5 = vsel %vm88_vm4, %v582_v21, %v584_v7 }
 0x352   :  { %588 = vst.msk [vmem:[#allocation7] sm:$0xf] %vm587_vm7, %v585_v5 }
 0x353   :  { %747 = shalt.err (!%p744_p9)
}
 0x354   :  { %608 = dma.vmem_to_hbm [thread:$0]  %s606_s20, 64, %s1020_s11, [#allocation8]  }
 0x355   :  { %756 = dma.done.wait [#allocation6], 64  }
 0x356   :  { %757 = vsyncadd [#allocation6], 4294967232 }
 0x357   :  { %758 = dma.done.wait [#allocation8], 64  }
 0x358   :  { %759 = vsyncadd [#allocation8], 4294967232 }
 0x359   :  { %615 = vsyncpa [#allocation6], 1 }
 0x35a   :  { %616 = vsyncpa [#allocation8], 1 }

</bundles_post_ra>
